<compile_context>
chip_gen: v5e
topology: v5e:2x2
jax: 0.10.0
libtpu: 0.0.40
codegen_flags: <defaults>
</compile_context>

<pallas_src>
import jax
import jax.numpy as jnp
from jax import lax
from jax.experimental import pallas as pl
from jax.experimental.pallas import tpu as pltpu

NEG_SLOPE = 0.01  # torch.nn.LeakyReLU default
IN_DIM = 57
LAYER_DIMS = [(57, 80), (80, 256), (256, 160), (160, 80), (80, 60), (60, 40), (40, 1)]


def _round_up(x, m):
    return (x + m - 1) // m * m


def _leaky(x):
    # max(x, 0.01*x) == LeakyReLU(0.01)(x); single VPU max instead of cmp+select.
    return jnp.maximum(x, NEG_SLOPE * x)


def _default_epilogue_dtype():
    """bf16 epilogue on chips with a native bf16 VPU (v6e/v7x), f32 otherwise."""
    try:
        kind = jax.devices()[0].device_kind.lower()
    except Exception:
        return jnp.float32
    if any(tag in kind for tag in ("v2", "v3", "v4", "v5")):
        return jnp.float32
    return jnp.bfloat16


# -----------------------------------------------------------------------------
# Kernel
# -----------------------------------------------------------------------------
def make_critic_kernel(epilogue_dtype):
    def critic_kernel(x_ref,
                      w1, b1, w2, b2, w3, b3, w4, b4, w5, b5, w6, b6, w7, b7,
                      out_ref):
        """Full MLP forward for one (TILE_B, 57) batch block.

        Weights are bf16, zero-padded to lane-aligned shapes.  Hidden biases are
        stored in `epilogue_dtype`; the final bias is f32.  Hidden activations
        are materialized in bf16.  The final layer is a (1, K) row so the output
        block is a lane-dense (1, TILE_B) slab.
        """
        # Single cast of the input; all later layers already produce bf16.
        h = x_ref[...].astype(jnp.bfloat16)                      # (TILE_B, 57)

        for w_ref, b_ref in ((w1, b1), (w2, b2), (w3, b3),
                             (w4, b4), (w5, b5), (w6, b6)):
            acc = jnp.dot(h, w_ref[...], preferred_element_type=jnp.float32)
            z = acc.astype(epilogue_dtype) + b_ref[...]
            h = _leaky(z).astype(jnp.bfloat16)                   # bf16 materialization

        # Final 40 -> 1 layer, transposed: (1, K) x (TILE_B, K)^T -> (1, TILE_B)
        v = lax.dot_general(w7[...], h,
                            dimension_numbers=(((1,), (1,)), ((), ())),
                            preferred_element_type=jnp.float32)
        out_ref[...] = (v + b7[...]).astype(out_ref.dtype)

    return critic_kernel


# -----------------------------------------------------------------------------
# Parameter packing (padding + bf16 weights)
# -----------------------------------------------------------------------------
def pack_params(params, epilogue_dtype=None):
    """Zero-pad weights to lane-aligned shapes, cast weights to bf16.

    Hidden layer i: W -> (Kp, Np), Np = round_up(N, 128), Kp = previous Np
    (Kp = 57 for layer 1); bias -> (1, Np) in `epilogue_dtype`.
    Final layer: stored transposed as a (1, Kp) bf16 row; bias -> (1, 1) f32.
    Padded regions are zero, so padded activation columns stay exactly 0.
    """
    if epilogue_dtype is None:
        epilogue_dtype = _default_epilogue_dtype()
    packed = []
    kp = IN_DIM
    n_layers = len(params)
    for li, (w, b) in enumerate(params):
        k, n = w.shape
        if li == n_layers - 1:
            w_row = jnp.zeros((1, kp), jnp.float32).at[0, :k].set(w[:, 0])
            packed.append((w_row.astype(jnp.bfloat16),
                           b.reshape(1, 1).astype(jnp.float32)))
        else:
            np_ = _round_up(n, 128)
            w_pad = jnp.zeros((kp, np_), jnp.float32).at[:k, :n].set(w)
            b_pad = jnp.zeros((1, np_), jnp.float32).at[0, :n].set(b)
            packed.append((w_pad.astype(jnp.bfloat16),
                           b_pad.astype(epilogue_dtype)))
            kp = np_
    return packed, epilogue_dtype


# -----------------------------------------------------------------------------
# Tile selection
# -----------------------------------------------------------------------------
def _choose_tile(B, tile_b):
    """Pick the batch tile.  Single block for small B; otherwise guarantee
    >= 2 grid steps (keeps both v7x TensorCores busy) and tb % 128 == 0
    (lane-dense (1, tb) output blocks)."""
    tile_b = max(int(tile_b), 8)
    tb_single = _round_up(B, 8)
    if tb_single <= tile_b and B <= 256:
        return tb_single                       # one grid step, exact fit
    target = min(tile_b, _round_up(pl.cdiv(B, 2), 128))
    return max(128, _round_up(target, 128))


# -----------------------------------------------------------------------------
# Wrapper
# -----------------------------------------------------------------------------
def critic_forward(state, packed_params, epilogue_dtype, *, tile_b=4096):
    """state: (B, 57) f32.  Returns value of shape (B,)  (== value.squeeze(-1))."""
    B, F = state.shape
    assert F == IN_DIM, F

    tb = _choose_tile(B, tile_b)
    b_pad = _round_up(B, tb)
    if b_pad != B:
        state = jnp.pad(state, ((0, b_pad - B), (0, 0)))

    grid = (b_pad // tb,)

    flat = []
    for w, b in packed_params:
        flat += [w, b]

    in_specs = [pl.BlockSpec((tb, IN_DIM), lambda i: (i, 0))]
    in_specs += [pl.BlockSpec(a.shape, lambda i: (0, 0)) for a in flat]  # resident
    out_spec = pl.BlockSpec((1, tb), lambda i: (0, i))                   # lane-dense

    flops = 2 * b_pad * sum(k * n for k, n in LAYER_DIMS)
    bytes_accessed = (b_pad * IN_DIM * 4 + b_pad * 4
                      + sum(int(a.size) * a.dtype.itemsize for a in flat))

    out = pl.pallas_call(
        make_critic_kernel(epilogue_dtype),
        out_shape=jax.ShapeDtypeStruct((1, b_pad), jnp.float32),
        grid=grid,
        in_specs=in_specs,
        out_specs=out_spec,
        compiler_params=pltpu.CompilerParams(
            dimension_semantics=("parallel",)),
        cost_estimate=pl.CostEstimate(flops=flops,
                                      transcendentals=0,
                                      bytes_accessed=bytes_accessed),
    )(state, *flat)

    # squeeze(-1) + drop batch padding — pure glue, outside the kernel.
    return out[0, :B]


# -----------------------------------------------------------------------------
# Init + references
# -----------------------------------------------------------------------------
def init_params(key):
    """torch.nn.Linear default init: U(-1/sqrt(fan_in), 1/sqrt(fan_in)) for W and b.
    W stored as (in, out) so y = x @ W + b."""
    params = []
    for (fan_in, fan_out) in LAYER_DIMS:
        key, kw, kb = jax.random.split(key, 3)
        bound = 1.0 / jnp.sqrt(jnp.float32(fan_in))
        w = jax.random.uniform(kw, (fan_in, fan_out), jnp.float32, -bound, bound)
        b = jax.random.uniform(kb, (fan_out,), jnp.float32, -bound, bound)
        params.append((w, b))
    return params


def reference_forward_f32(state, params):
    h = state
    for i, (w, b) in enumerate(params):
        h = h @ w + b
        if i < len(params) - 1:
            h = jnp.where(h > 0, h, NEG_SLOPE * h)
    return h[:, 0]


def reference_forward_mirror(state, params, epilogue_dtype):
    """Mirrors the kernel's numerics: bf16 matmul operands, f32 MXU accumulation,
    epilogue in `epilogue_dtype`, bf16 activation materialization."""
    h = state.astype(jnp.bfloat16)
    for i, (w, b) in enumerate(params):
        acc = jnp.dot(h, w.astype(jnp.bfloat16),
                      preferred_element_type=jnp.float32)
        if i < len(params) - 1:
            z = acc.astype(epilogue_dtype) + b.astype(epilogue_dtype)
            h = _leaky(z).astype(jnp.bfloat16)
        else:
            h = acc + b.astype(jnp.float32)
    return h[:, 0]


# -----------------------------------------------------------------------------
if __name__ == "__main__":
    key = jax.random.PRNGKey(0)
    key, kx, kx2 = jax.random.split(key, 3)

    params = init_params(key)
    packed, epi_dtype = pack_params(params)

    # Small-batch check (single grid block).
    batch = 8
    state = jax.random.normal(kx, (batch, IN_DIM), dtype=jnp.float32)
    value = jax.block_until_ready(critic_forward(state, packed, epi_dtype))
    assert value.shape == (batch,), value.shape
    ref_mirror = reference_forward_mirror(state, params, epi_dtype)
    ref_f32 = reference_forward_f32(state, params)
    assert jnp.allclose(value, ref_mirror, atol=3e-3, rtol=3e-3), (value, ref_mirror)
    assert jnp.allclose(value, ref_f32, atol=7.5e-2, rtol=7.5e-2), (value, ref_f32)

    # Multi-block grid check with default tiling (B > 256 -> >= 2 grid steps).
    batch2 = 300
    state2 = jax.random.normal(kx2, (batch2, IN_DIM), dtype=jnp.float32)
    value2 = jax.block_until_ready(critic_forward(state2, packed, epi_dtype))
    assert value2.shape == (batch2,), value2.shape
    ref2_mirror = reference_forward_mirror(state2, params, epi_dtype)
    ref2_f32 = reference_forward_f32(state2, params)
    assert jnp.allclose(value2, ref2_mirror, atol=3e-3, rtol=3e-3)
    assert jnp.allclose(value2, ref2_f32, atol=7.5e-2, rtol=7.5e-2)

    # Same batch with a user tile that is not a multiple of 128 (auto-rounded).
    value3 = jax.block_until_ready(
        critic_forward(state2, packed, epi_dtype, tile_b=200))
    assert value3.shape == (batch2,), value3.shape
    assert jnp.allclose(value3, ref2_mirror, atol=3e-3, rtol=3e-3)

    print("KERNEL_OK")
</pallas_src>

<mosaic_0001>
module attributes {stable_mosaic.version = 11 : i64} {
  func.func @critic_kernel(%arg0: i32, %arg1: memref<8x57xf32, #tpu.memory_space<vmem>>, %arg2: memref<57x128xbf16, #tpu.memory_space<vmem>>, %arg3: memref<1x128xbf16, #tpu.memory_space<vmem>>, %arg4: memref<128x256xbf16, #tpu.memory_space<vmem>>, %arg5: memref<1x256xbf16, #tpu.memory_space<vmem>>, %arg6: memref<256x256xbf16, #tpu.memory_space<vmem>>, %arg7: memref<1x256xbf16, #tpu.memory_space<vmem>>, %arg8: memref<256x128xbf16, #tpu.memory_space<vmem>>, %arg9: memref<1x128xbf16, #tpu.memory_space<vmem>>, %arg10: memref<128x128xbf16, #tpu.memory_space<vmem>>, %arg11: memref<1x128xbf16, #tpu.memory_space<vmem>>, %arg12: memref<128x128xbf16, #tpu.memory_space<vmem>>, %arg13: memref<1x128xbf16, #tpu.memory_space<vmem>>, %arg14: memref<1x128xbf16, #tpu.memory_space<vmem>>, %arg15: memref<1x1xf32, #tpu.memory_space<vmem>>, %arg16: memref<1x8xf32, #tpu.memory_space<vmem>>) attributes {dimension_semantics = [#tpu.dimension_semantics<parallel>], iteration_bounds = array<i64: 1>, scalar_prefetch = 0 : i64, scratch_operands = 0 : i64, tpu.core_type = #tpu.core_type<tc>, window_params = [{transform_indices = @transform_0, window_bounds = array<i64: 8, 57>}, {pipeline_mode = #tpu.pipeline_mode<synchronous>, transform_indices = @transform_1, window_bounds = array<i64: 57, 128>}, {pipeline_mode = #tpu.pipeline_mode<synchronous>, transform_indices = @transform_2, window_bounds = array<i64: 1, 128>}, {pipeline_mode = #tpu.pipeline_mode<synchronous>, transform_indices = @transform_3, window_bounds = array<i64: 128, 256>}, {pipeline_mode = #tpu.pipeline_mode<synchronous>, transform_indices = @transform_4, window_bounds = array<i64: 1, 256>}, {pipeline_mode = #tpu.pipeline_mode<synchronous>, transform_indices = @transform_5, window_bounds = array<i64: 256, 256>}, {pipeline_mode = #tpu.pipeline_mode<synchronous>, transform_indices = @transform_6, window_bounds = array<i64: 1, 256>}, {pipeline_mode = #tpu.pipeline_mode<synchronous>, transform_indices = @transform_7, window_bounds = array<i64: 256, 128>}, {pipeline_mode = #tpu.pipeline_mode<synchronous>, transform_indices = @transform_8, window_bounds = array<i64: 1, 128>}, {pipeline_mode = #tpu.pipeline_mode<synchronous>, transform_indices = @transform_9, window_bounds = array<i64: 128, 128>}, {pipeline_mode = #tpu.pipeline_mode<synchronous>, transform_indices = @transform_10, window_bounds = array<i64: 1, 128>}, {pipeline_mode = #tpu.pipeline_mode<synchronous>, transform_indices = @transform_11, window_bounds = array<i64: 128, 128>}, {pipeline_mode = #tpu.pipeline_mode<synchronous>, transform_indices = @transform_12, window_bounds = array<i64: 1, 128>}, {pipeline_mode = #tpu.pipeline_mode<synchronous>, transform_indices = @transform_13, window_bounds = array<i64: 1, 128>}, {pipeline_mode = #tpu.pipeline_mode<synchronous>, transform_indices = @transform_14, window_bounds = array<i64: 1, 1>}, {transform_indices = @transform_15, window_bounds = array<i64: 1, 8>}]} {
    %c0 = arith.constant 0 : index
    %c0_0 = arith.constant 0 : index
    %0 = vector.load %arg1[%c0, %c0_0] : memref<8x57xf32, #tpu.memory_space<vmem>>, vector<8x57xf32>
    %1 = arith.truncf %0 : vector<8x57xf32> to vector<8x57xbf16>
    %c0_1 = arith.constant 0 : index
    %c0_2 = arith.constant 0 : index
    %2 = vector.load %arg2[%c0_1, %c0_2] : memref<57x128xbf16, #tpu.memory_space<vmem>>, vector<57x128xbf16>
    %cst = arith.constant dense<0.000000e+00> : vector<8x128xf32>
    %3 = tpu.matmul %1, %2, %cst {dimension_numbers = #tpu.dot_dimension_numbers<[1], [0], [0], [1], [0, 0, 1, 1], [], []>} : vector<8x57xbf16>, vector<57x128xbf16>, vector<8x128xf32> -> vector<8x128xf32>
    %4 = arith.truncf %3 : vector<8x128xf32> to vector<8x128xbf16>
    %c0_3 = arith.constant 0 : index
    %c0_4 = arith.constant 0 : index
    %5 = vector.load %arg3[%c0_3, %c0_4] : memref<1x128xbf16, #tpu.memory_space<vmem>>, vector<1x128xbf16>
    %6 = vector.broadcast %5 : vector<1x128xbf16> to vector<8x128xbf16>
    %7 = arith.addf %4, %6 : vector<8x128xbf16>
    %cst_5 = arith.constant 1.000980e-02 : bf16
    %8 = vector.broadcast %cst_5 : bf16 to vector<8x128xbf16>
    %9 = arith.mulf %8, %7 : vector<8x128xbf16>
    %10 = arith.maximumf %7, %9 : vector<8x128xbf16>
    %c0_6 = arith.constant 0 : index
    %c0_7 = arith.constant 0 : index
    %11 = vector.load %arg4[%c0_6, %c0_7] : memref<128x256xbf16, #tpu.memory_space<vmem>>, vector<128x256xbf16>
    %cst_8 = arith.constant dense<0.000000e+00> : vector<8x256xf32>
    %12 = tpu.matmul %10, %11, %cst_8 {dimension_numbers = #tpu.dot_dimension_numbers<[1], [0], [0], [1], [0, 0, 1, 1], [], []>} : vector<8x128xbf16>, vector<128x256xbf16>, vector<8x256xf32> -> vector<8x256xf32>
    %13 = arith.truncf %12 : vector<8x256xf32> to vector<8x256xbf16>
    %c0_9 = arith.constant 0 : index
    %c0_10 = arith.constant 0 : index
    %14 = vector.load %arg5[%c0_9, %c0_10] : memref<1x256xbf16, #tpu.memory_space<vmem>>, vector<1x256xbf16>
    %15 = vector.broadcast %14 : vector<1x256xbf16> to vector<8x256xbf16>
    %16 = arith.addf %13, %15 : vector<8x256xbf16>
    %cst_11 = arith.constant 1.000980e-02 : bf16
    %17 = vector.broadcast %cst_11 : bf16 to vector<8x256xbf16>
    %18 = arith.mulf %17, %16 : vector<8x256xbf16>
    %19 = arith.maximumf %16, %18 : vector<8x256xbf16>
    %c0_12 = arith.constant 0 : index
    %c0_13 = arith.constant 0 : index
    %20 = vector.load %arg6[%c0_12, %c0_13] : memref<256x256xbf16, #tpu.memory_space<vmem>>, vector<256x256xbf16>
    %cst_14 = arith.constant dense<0.000000e+00> : vector<8x256xf32>
    %21 = tpu.matmul %19, %20, %cst_14 {dimension_numbers = #tpu.dot_dimension_numbers<[1], [0], [0], [1], [0, 0, 1, 1], [], []>} : vector<8x256xbf16>, vector<256x256xbf16>, vector<8x256xf32> -> vector<8x256xf32>
    %22 = arith.truncf %21 : vector<8x256xf32> to vector<8x256xbf16>
    %c0_15 = arith.constant 0 : index
    %c0_16 = arith.constant 0 : index
    %23 = vector.load %arg7[%c0_15, %c0_16] : memref<1x256xbf16, #tpu.memory_space<vmem>>, vector<1x256xbf16>
    %24 = vector.broadcast %23 : vector<1x256xbf16> to vector<8x256xbf16>
    %25 = arith.addf %22, %24 : vector<8x256xbf16>
    %cst_17 = arith.constant 1.000980e-02 : bf16
    %26 = vector.broadcast %cst_17 : bf16 to vector<8x256xbf16>
    %27 = arith.mulf %26, %25 : vector<8x256xbf16>
    %28 = arith.maximumf %25, %27 : vector<8x256xbf16>
    %c0_18 = arith.constant 0 : index
    %c0_19 = arith.constant 0 : index
    %29 = vector.load %arg8[%c0_18, %c0_19] : memref<256x128xbf16, #tpu.memory_space<vmem>>, vector<256x128xbf16>
    %cst_20 = arith.constant dense<0.000000e+00> : vector<8x128xf32>
    %30 = tpu.matmul %28, %29, %cst_20 {dimension_numbers = #tpu.dot_dimension_numbers<[1], [0], [0], [1], [0, 0, 1, 1], [], []>} : vector<8x256xbf16>, vector<256x128xbf16>, vector<8x128xf32> -> vector<8x128xf32>
    %31 = arith.truncf %30 : vector<8x128xf32> to vector<8x128xbf16>
    %c0_21 = arith.constant 0 : index
    %c0_22 = arith.constant 0 : index
    %32 = vector.load %arg9[%c0_21, %c0_22] : memref<1x128xbf16, #tpu.memory_space<vmem>>, vector<1x128xbf16>
    %33 = vector.broadcast %32 : vector<1x128xbf16> to vector<8x128xbf16>
    %34 = arith.addf %31, %33 : vector<8x128xbf16>
    %cst_23 = arith.constant 1.000980e-02 : bf16
    %35 = vector.broadcast %cst_23 : bf16 to vector<8x128xbf16>
    %36 = arith.mulf %35, %34 : vector<8x128xbf16>
    %37 = arith.maximumf %34, %36 : vector<8x128xbf16>
    %c0_24 = arith.constant 0 : index
    %c0_25 = arith.constant 0 : index
    %38 = vector.load %arg10[%c0_24, %c0_25] : memref<128x128xbf16, #tpu.memory_space<vmem>>, vector<128x128xbf16>
    %cst_26 = arith.constant dense<0.000000e+00> : vector<8x128xf32>
    %39 = tpu.matmul %37, %38, %cst_26 {dimension_numbers = #tpu.dot_dimension_numbers<[1], [0], [0], [1], [0, 0, 1, 1], [], []>} : vector<8x128xbf16>, vector<128x128xbf16>, vector<8x128xf32> -> vector<8x128xf32>
    %40 = arith.truncf %39 : vector<8x128xf32> to vector<8x128xbf16>
    %c0_27 = arith.constant 0 : index
    %c0_28 = arith.constant 0 : index
    %41 = vector.load %arg11[%c0_27, %c0_28] : memref<1x128xbf16, #tpu.memory_space<vmem>>, vector<1x128xbf16>
    %42 = vector.broadcast %41 : vector<1x128xbf16> to vector<8x128xbf16>
    %43 = arith.addf %40, %42 : vector<8x128xbf16>
    %cst_29 = arith.constant 1.000980e-02 : bf16
    %44 = vector.broadcast %cst_29 : bf16 to vector<8x128xbf16>
    %45 = arith.mulf %44, %43 : vector<8x128xbf16>
    %46 = arith.maximumf %43, %45 : vector<8x128xbf16>
    %c0_30 = arith.constant 0 : index
    %c0_31 = arith.constant 0 : index
    %47 = vector.load %arg12[%c0_30, %c0_31] : memref<128x128xbf16, #tpu.memory_space<vmem>>, vector<128x128xbf16>
    %cst_32 = arith.constant dense<0.000000e+00> : vector<8x128xf32>
    %48 = tpu.matmul %46, %47, %cst_32 {dimension_numbers = #tpu.dot_dimension_numbers<[1], [0], [0], [1], [0, 0, 1, 1], [], []>} : vector<8x128xbf16>, vector<128x128xbf16>, vector<8x128xf32> -> vector<8x128xf32>
    %49 = arith.truncf %48 : vector<8x128xf32> to vector<8x128xbf16>
    %c0_33 = arith.constant 0 : index
    %c0_34 = arith.constant 0 : index
    %50 = vector.load %arg13[%c0_33, %c0_34] : memref<1x128xbf16, #tpu.memory_space<vmem>>, vector<1x128xbf16>
    %51 = vector.broadcast %50 : vector<1x128xbf16> to vector<8x128xbf16>
    %52 = arith.addf %49, %51 : vector<8x128xbf16>
    %cst_35 = arith.constant 1.000980e-02 : bf16
    %53 = vector.broadcast %cst_35 : bf16 to vector<8x128xbf16>
    %54 = arith.mulf %53, %52 : vector<8x128xbf16>
    %55 = arith.maximumf %52, %54 : vector<8x128xbf16>
    %c0_36 = arith.constant 0 : index
    %c0_37 = arith.constant 0 : index
    %56 = vector.load %arg14[%c0_36, %c0_37] : memref<1x128xbf16, #tpu.memory_space<vmem>>, vector<1x128xbf16>
    %cst_38 = arith.constant dense<0.000000e+00> : vector<1x8xf32>
    %57 = tpu.matmul %56, %55, %cst_38 {dimension_numbers = #tpu.dot_dimension_numbers<[1], [1], [0], [0], [0, 0, 1, 0], [], []>} : vector<1x128xbf16>, vector<8x128xbf16>, vector<1x8xf32> -> vector<1x8xf32>
    %c0_39 = arith.constant 0 : index
    %c0_40 = arith.constant 0 : index
    %58 = vector.load %arg15[%c0_39, %c0_40] : memref<1x1xf32, #tpu.memory_space<vmem>>, vector<1x1xf32>
    %59 = vector.broadcast %58 : vector<1x1xf32> to vector<1x8xf32>
    %60 = arith.addf %57, %59 : vector<1x8xf32>
    %c0_41 = arith.constant 0 : index
    %c0_42 = arith.constant 0 : index
    %61 = vector.load %arg16[%c0_41, %c0_42] : memref<1x8xf32, #tpu.memory_space<vmem>>, vector<1x8xf32>
    tpu.vector_store %arg16[%c0_41, %c0_42], %60 {strides = array<i32>} : memref<1x8xf32, #tpu.memory_space<vmem>>, vector<1x8xf32>,
    return
  }
  func.func @transform_0(%arg0: i32) -> (i32, i32) {
    %c0_i32 = arith.constant 0 : i32
    %c0_i32_0 = arith.constant 0 : i32
    return %arg0, %c0_i32 : i32, i32
  }
  func.func @transform_1(%arg0: i32) -> (i32, i32) {
    %c0_i32 = arith.constant 0 : i32
    %c0_i32_0 = arith.constant 0 : i32
    %c0_i32_1 = arith.constant 0 : i32
    return %c0_i32, %c0_i32_0 : i32, i32
  }
  func.func @transform_2(%arg0: i32) -> (i32, i32) {
    %c0_i32 = arith.constant 0 : i32
    %c0_i32_0 = arith.constant 0 : i32
    %c0_i32_1 = arith.constant 0 : i32
    return %c0_i32, %c0_i32_0 : i32, i32
  }
  func.func @transform_3(%arg0: i32) -> (i32, i32) {
    %c0_i32 = arith.constant 0 : i32
    %c0_i32_0 = arith.constant 0 : i32
    %c0_i32_1 = arith.constant 0 : i32
    return %c0_i32, %c0_i32_0 : i32, i32
  }
  func.func @transform_4(%arg0: i32) -> (i32, i32) {
    %c0_i32 = arith.constant 0 : i32
    %c0_i32_0 = arith.constant 0 : i32
    %c0_i32_1 = arith.constant 0 : i32
    return %c0_i32, %c0_i32_0 : i32, i32
  }
  func.func @transform_5(%arg0: i32) -> (i32, i32) {
    %c0_i32 = arith.constant 0 : i32
    %c0_i32_0 = arith.constant 0 : i32
    %c0_i32_1 = arith.constant 0 : i32
    return %c0_i32, %c0_i32_0 : i32, i32
  }
  func.func @transform_6(%arg0: i32) -> (i32, i32) {
    %c0_i32 = arith.constant 0 : i32
    %c0_i32_0 = arith.constant 0 : i32
    %c0_i32_1 = arith.constant 0 : i32
    return %c0_i32, %c0_i32_0 : i32, i32
  }
  func.func @transform_7(%arg0: i32) -> (i32, i32) {
    %c0_i32 = arith.constant 0 : i32
    %c0_i32_0 = arith.constant 0 : i32
    %c0_i32_1 = arith.constant 0 : i32
    return %c0_i32, %c0_i32_0 : i32, i32
  }
  func.func @transform_8(%arg0: i32) -> (i32, i32) {
    %c0_i32 = arith.constant 0 : i32
    %c0_i32_0 = arith.constant 0 : i32
    %c0_i32_1 = arith.constant 0 : i32
    return %c0_i32, %c0_i32_0 : i32, i32
  }
  func.func @transform_9(%arg0: i32) -> (i32, i32) {
    %c0_i32 = arith.constant 0 : i32
    %c0_i32_0 = arith.constant 0 : i32
    %c0_i32_1 = arith.constant 0 : i32
    return %c0_i32, %c0_i32_0 : i32, i32
  }
  func.func @transform_10(%arg0: i32) -> (i32, i32) {
    %c0_i32 = arith.constant 0 : i32
    %c0_i32_0 = arith.constant 0 : i32
    %c0_i32_1 = arith.constant 0 : i32
    return %c0_i32, %c0_i32_0 : i32, i32
  }
  func.func @transform_11(%arg0: i32) -> (i32, i32) {
    %c0_i32 = arith.constant 0 : i32
    %c0_i32_0 = arith.constant 0 : i32
    %c0_i32_1 = arith.constant 0 : i32
    return %c0_i32, %c0_i32_0 : i32, i32
  }
  func.func @transform_12(%arg0: i32) -> (i32, i32) {
    %c0_i32 = arith.constant 0 : i32
    %c0_i32_0 = arith.constant 0 : i32
    %c0_i32_1 = arith.constant 0 : i32
    return %c0_i32, %c0_i32_0 : i32, i32
  }
  func.func @transform_13(%arg0: i32) -> (i32, i32) {
    %c0_i32 = arith.constant 0 : i32
    %c0_i32_0 = arith.constant 0 : i32
    %c0_i32_1 = arith.constant 0 : i32
    return %c0_i32, %c0_i32_0 : i32, i32
  }
  func.func @transform_14(%arg0: i32) -> (i32, i32) {
    %c0_i32 = arith.constant 0 : i32
    %c0_i32_0 = arith.constant 0 : i32
    %c0_i32_1 = arith.constant 0 : i32
    return %c0_i32, %c0_i32_0 : i32, i32
  }
  func.func @transform_15(%arg0: i32) -> (i32, i32) {
    %c0_i32 = arith.constant 0 : i32
    %c0_i32_0 = arith.constant 0 : i32
    return %c0_i32, %arg0 : i32, i32
  }
}

</mosaic_0001>

<bundles_post_ra>
// kernel: tpu_custom_call.1
= control target key start
LH: loop header
LB: loop body
LE: loop exit
PB: predicated region body
PF: predicated region fallthrough
CT: control target
= control target key end

     0   :  { %s1908_s0 = inlined_call_operand.hbm [shape: f32[8,57], index: 0, kind: input, shape index: {}]   ;;  %s1909_s1 = inlined_call_operand.hbm [shape: bf16[57,128], index: 1, kind: input, shape index: {}]   ;;  %s1910_s2 = inlined_call_operand.hbm [shape: bf16[1,128], index: 2, kind: input, shape index: {}]   ;;  %s1911_s3 = inlined_call_operand.hbm [shape: bf16[128,256], index: 3, kind: input, shape index: {}]   ;;  %s1912_s4 = inlined_call_operand.vmem [shape: bf16[1,256], index: 4, kind: input, shape index: {}]   ;;  %s1913_s5 = inlined_call_operand.hbm [shape: bf16[256,256], index: 5, kind: input, shape index: {}]   ;;  %s1914_s6 = inlined_call_operand.vmem [shape: bf16[1,256], index: 6, kind: input, shape index: {}]   ;;  %s1915_s7 = inlined_call_operand.hbm [shape: bf16[256,128], index: 7, kind: input, shape index: {}]   ;;  %s1916_s8 = inlined_call_operand.vmem [shape: bf16[1,128], index: 8, kind: input, shape index: {}]   ;;  %s1917_s9 = inlined_call_operand.hbm [shape: bf16[128,128], index: 9, kind: input, shape index: {}]   ;;  %s1918_s10 = inlined_call_operand.vmem [shape: bf16[1,128], index: 10, kind: input, shape index: {}]   ;;  %s1919_s11 = inlined_call_operand.hbm [shape: bf16[128,128], index: 11, kind: input, shape index: {}]   ;;  %s1920_s12 = inlined_call_operand.vmem [shape: bf16[1,128], index: 12, kind: input, shape index: {}]   ;;  %s1921_s13 = inlined_call_operand.vmem [shape: bf16[1,128], index: 13, kind: input, shape index: {}]   ;;  %s1922_s14 = inlined_call_operand.<no memory space> [shape: f32[1,1], index: 14, kind: input, shape index: {}]   ;;  %s1923_s15 = inlined_call_operand.hbm [shape: f32[1,8], index: 15, kind: output, shape index: {}]  }
   0x1   :  { %v20_v0 = vstv %s1922_s14 }
   0x2   :  { %21 = vst [vmem:[#allocation2] sm:$0x1] %v20_v0 }
   0x3   :  { %22 = vsyncpa [#allocation4], 0 }
   0x4   :  { %23 = vsyncpa [#allocation7], 0 }
   0x5   :  { %24 = vsyncpa [#allocation10], 0 }
   0x6   :  { %25 = vsyncpa [#allocation13], 0 }
   0x7   :  { %26 = vsyncpa [#allocation16], 0  ;;  %s43_s22 = sshll.u32 %s1909_s1, 4  ;;  %s44_s22 = int_to_ptr.hbm [resolvable:$true] %s43_s22 }
   0x8   :  { %27 = vsyncpa [#allocation5], 0  ;;  %s1739_s23 = smov [#allocation6]   ;;  %s67_s27 = sshll.u32 %s1911_s3, 4  ;;  %s68_s27 = int_to_ptr.hbm [resolvable:$true] %s67_s27 }
   0x9   :  { %s45_s24 = sshll.u32 %s1739_s23, 4  ;;  %s1740_s14 = smov 64   ;;  %s46_s24 = int_to_ptr.vmem [resolvable:$true] %s45_s24 }
   0xa   :  { %s1741_s28 = smov 4   ;;  %s1742_s29 = smov [#allocation9]  }
   0xb   :  { %51 = dma.hbm_to_vmem [thread:$0]  %s44_s22, 512, %s46_s24, [#allocation7], %s1740_s14, %s1740_s14, %s1741_s28  }
   0xc   :  { %s69_s30 = sshll.u32 %s1742_s29, 4  ;;  %s1743_s1 = smov 128   ;;  %s70_s30 = int_to_ptr.vmem [resolvable:$true] %s69_s30 }
   0xd   :  { %s1744_s16 = smov 8   ;;  %s97_s3 = sshll.u32 %s1915_s7, 4  ;;  %s98_s3 = int_to_ptr.hbm [resolvable:$true] %s97_s3 }
   0xe   :  { %75 = dma.hbm_to_vmem [thread:$0]  %s68_s27, 2048, %s70_s30, [#allocation10], %s1743_s1, %s1743_s1, %s1744_s16  }
   0xf   :  { %s1745_s19 = smov [#allocation12]   ;;  %s33_s23 = sshll.u32 %s1908_s0, 4  ;;  %s34_s23 = int_to_ptr.hbm [resolvable:$true] %s33_s23 }
  0x10   :  { %s99_s20 = sshll.u32 %s1745_s19, 4  ;;  %s1746_s24 = smov [#allocation3]   ;;  %s100_s20 = int_to_ptr.vmem [resolvable:$true] %s99_s20 }
  0x11   :  { %105 = dma.hbm_to_vmem [thread:$0]  %s98_s3, 2048, %s100_s20, [#allocation13], %s1740_s14, %s1740_s14, %s1741_s28  }
  0x12   :  { %s35_s25 = sshll.u32 %s1746_s24, 4  ;;  %s57_s29 = sshll.u32 %s1910_s2, 4  ;;  %s36_s25 = int_to_ptr.vmem [resolvable:$true] %s35_s25  ;;  %s58_s29 = int_to_ptr.hbm [resolvable:$true] %s57_s29 }
  0x13   :  { %38 = dma.hbm_to_vmem [thread:$0]  %s34_s23, 128, %s36_s25, [#allocation4]  }
  0x14   :  { %s82_s17 = sshll.u32 %s1913_s5, 4  ;;  %s1747_s18 = smov [#allocation8]   ;;  %s83_s17 = int_to_ptr.hbm [resolvable:$true] %s82_s17 }
  0x15   :  { %s59_s0 = sshll.u32 %s1747_s18, 4  ;;  %s1748_s3 = smov [#allocation11]   ;;  %s60_s0 = int_to_ptr.vmem [resolvable:$true] %s59_s0 }
  0x16   :  { %62 = dma.hbm_to_vmem [thread:$0]  %s58_s29, 16, %s60_s0, [#allocation7]  }
  0x17   :  { %s84_s19 = sshll.u32 %s1748_s3, 4  ;;  %s112_s22 = sshll.u32 %s1917_s9, 4  ;;  %s85_s19 = int_to_ptr.vmem [resolvable:$true] %s84_s19  ;;  %s113_s22 = int_to_ptr.hbm [resolvable:$true] %s112_s22 }
  0x18   :  { %90 = dma.hbm_to_vmem [thread:$0]  %s83_s17, 4096, %s85_s19, [#allocation10], %s1743_s1, %s1743_s1, %s1744_s16  }
  0x19   :  { %s127_s5 = sshll.u32 %s1919_s11, 4  ;;  %s1749_s24 = smov [#allocation14]   ;;  %s128_s5 = int_to_ptr.hbm [resolvable:$true] %s127_s5 }
  0x1a   :  { %s114_s25 = sshll.u32 %s1749_s24, 4  ;;  %s1750_s26 = smov [#allocation15]   ;;  %s115_s25 = int_to_ptr.vmem [resolvable:$true] %s114_s25 }
  0x1b   :  { %120 = dma.hbm_to_vmem [thread:$0]  %s113_s22, 1024, %s115_s25, [#allocation13], %s1740_s14, %s1740_s14, %s1741_s28  }
  0x1c   :  { %s129_s9 = sshll.u32 %s1750_s26, 4  ;;  %s130_s9 = int_to_ptr.vmem [resolvable:$true] %s129_s9 }
  0x1d   :  { %135 = dma.hbm_to_vmem [thread:$0]  %s128_s5, 1024, %s130_s9, [#allocation16], %s1740_s14, %s1740_s14, %s1741_s28  }
  0x1e   :  { %1727 = dma.done.wait [#allocation4], 128  }
  0x1f   :  { %1728 = vsyncadd [#allocation4], 4294967168 }
  0x20   :  { %1729 = dma.done.wait [#allocation7], 528  }
  0x21   :  { %1730 = vsyncadd [#allocation7], 4294966768 }
  0x22   :  { %1731 = dma.done.wait [#allocation10], 6144  }
  0x23   :  { %1732 = vsyncadd [#allocation10], 4294961152 }
  0x24   :  { %1733 = dma.done.wait [#allocation13], 3072  }
  0x25   :  { %1734 = vsyncadd [#allocation13], 4294964224 }
  0x26   :  { %1735 = dma.done.wait [#allocation16], 1024  }
  0x27   :  { %1736 = vsyncadd [#allocation16], 4294966272  ;;  %vm212_vm0 = vcmask 1043456   ;;  %vm213_vm1 = vcmask 1044480   ;;  %v1751_v1 = vmov 65535   ;;  %v1413_v18 = vld [vmem:[#allocation6 + $0x10] sm:$0xff] }
  0x28   :  { %v214_v2 = vsel %vm212_vm0, 4294967295, %v1751_v1  ;;  %v1088_v3 = vld [vmem:[#allocation6 + $0x18] sm:$0xf]  ;;  %v1414_v4 = vld [vmem:[#allocation6 + $0x18] sm:$0x10]  ;;  %v1412_v25 = vld [vmem:[#allocation6 + $0x8] sm:$0xff] }
  0x29   :  { %v215_v5 = vsel %vm213_vm1, %v214_v2, 0  ;;  %v1089_v6 = vor.u32 %v1414_v4, %v1088_v3  ;;  %v1149_v7 = vld [vmem:[#allocation9 + $0x70] sm:$0xf]  ;;  %v1430_v8 = vld [vmem:[#allocation9 + $0x74] sm:$0xf0]  ;;  %v1411_v32 = vld [vmem:[#allocation6] sm:$0xff] }
  0x2a   :  { %v1429_v9 = vld [vmem:[#allocation9 + $0x74] sm:$0xf]  ;;  %v1150_v11 = vor.u32 %v1430_v8, %v1149_v7  ;;  %v1151_v12 = vld [vmem:[#allocation9 + $0x78] sm:$0xf0]  ;;  %v1141_v13 = vld [vmem:[#allocation9 + $0x60] sm:$0xf] }
  0x2b   :  { %v217_v10 = vand.u32 %v1089_v6, %v215_v5  ;;  %v1428_v14 = vld [vmem:[#allocation9 + $0x64] sm:$0xf0]  ;;  %v1154_v15 = vor.u32 %v1429_v9, %v1151_v12  ;;  %v1427_v16 = vld [vmem:[#allocation9 + $0x64] sm:$0xf]  ;;  %v1143_v17 = vld [vmem:[#allocation9 + $0x68] sm:$0xf0] }
  0x2c   :  { %344 = vmatpush.bf16.msra.mxu1 %v1150_v11  ;;  %v1142_v19 = vor.u32 %v1428_v14, %v1141_v13  ;;  %v1146_v20 = vor.u32 %v1427_v16, %v1143_v17  ;;  %v1133_v21 = vld [vmem:[#allocation9 + $0x50] sm:$0xf]  ;;  %v1426_v22 = vld [vmem:[#allocation9 + $0x54] sm:$0xf0]  ;;  %v1425_v23 = vld [vmem:[#allocation9 + $0x54] sm:$0xf] }
  0x2d   :  { %223 = vmatpush.bf16.msra.mxu0 %v217_v10  ;;  %357 = vmatpush.bf16.msra.mxu2 %v1154_v15  ;;  %v1135_v24 = vld [vmem:[#allocation9 + $0x58] sm:$0xf0]  ;;  %v1134_v26 = vor.u32 %v1426_v22, %v1133_v21  ;;  %v1125_v28 = vld [vmem:[#allocation9 + $0x40] sm:$0xf]  ;;  %v1424_v29 = vld [vmem:[#allocation9 + $0x44] sm:$0xf0] }
  0x2e   :  { %v1138_v27 = vor.u32 %v1425_v23, %v1135_v24  ;;  %v1423_v30 = vld [vmem:[#allocation9 + $0x44] sm:$0xf]  ;;  %v1127_v31 = vld [vmem:[#allocation9 + $0x48] sm:$0xf0]  ;;  %v175_v33 = vld [vmem:[#allocation3] sm:$0xff]  ;;  %v1126_v34 = vor.u32 %v1424_v29, %v1125_v28  ;;  %vm208_vm2 = vcmask 465920  }
  0x2f   :  { %v1130_v35 = vor.u32 %v1423_v30, %v1127_v31  ;;  %v176_v36 = vpack.c.bf16 %v175_v33, %v175_v33  ;;  %v1117_v37 = vld [vmem:[#allocation9 + $0x30] sm:$0xf]  ;;  %v1422_v38 = vld [vmem:[#allocation9 + $0x34] sm:$0xf0]  ;;  %v1421_v39 = vld [vmem:[#allocation9 + $0x34] sm:$0xf] }
  0x30   :  { %345 = vmatpush.bf16.msra.mxu1 %v1142_v19  ;;  %v1118_v40 = vor.u32 %v1422_v38, %v1117_v37  ;;  %v1119_v41 = vld [vmem:[#allocation9 + $0x38] sm:$0xf0]  ;;  %v1109_v43 = vld [vmem:[#allocation9 + $0x20] sm:$0xf]  ;;  %v1420_v44 = vld [vmem:[#allocation9 + $0x24] sm:$0xf0] }
  0x31   :  { %224 = vmatpush.bf16.msra.mxu0 %v1413_v18  ;;  %358 = vmatpush.bf16.msra.mxu2 %v1146_v20  ;;  %v1122_v42 = vor.u32 %v1421_v39, %v1119_v41  ;;  %v1419_v45 = vld [vmem:[#allocation9 + $0x24] sm:$0xf]  ;;  %v1110_v46 = vor.u32 %v1420_v44, %v1109_v43  ;;  %v1111_v47 = vld [vmem:[#allocation9 + $0x28] sm:$0xf0]  ;;  %v1101_v49 = vld [vmem:[#allocation9 + $0x10] sm:$0xf] }
  0x32   :  { %v1114_v48 = vor.u32 %v1419_v45, %v1111_v47  ;;  %v1418_v50 = vld [vmem:[#allocation9 + $0x14] sm:$0xf0]  ;;  %v1417_v51 = vld [vmem:[#allocation9 + $0x14] sm:$0xf]  ;;  %v1103_v53 = vld [vmem:[#allocation9 + $0x18] sm:$0xf0] }
  0x33   :  { %v1102_v52 = vor.u32 %v1418_v50, %v1101_v49  ;;  %v1093_v54 = vld [vmem:[#allocation9] sm:$0xf]  ;;  %v1416_v55 = vld [vmem:[#allocation9 + $0x4] sm:$0xf0]  ;;  %v1106_v56 = vor.u32 %v1417_v51, %v1103_v53  ;;  %v1415_v57 = vld [vmem:[#allocation9 + $0x4] sm:$0xf] }
  0x34   :  { %346 = vmatpush.bf16.msra.mxu1 %v1134_v26  ;;  %v1095_v58 = vld [vmem:[#allocation9 + $0x8] sm:$0xf0]  ;;  %v1094_v59 = vor.u32 %v1416_v55, %v1093_v54  ;;  %v1213_v61 = vld [vmem:[#allocation11 + $0x70] sm:$0xf]  ;;  %v1446_v62 = vld [vmem:[#allocation11 + $0x74] sm:$0xf0] }
  0x35   :  { %225 = vmatpush.bf16.msra.mxu0 %v1412_v25  ;;  %359 = vmatpush.bf16.msra.mxu2 %v1138_v27  ;;  %v1098_v60 = vor.u32 %v1415_v57, %v1095_v58  ;;  %v1277_v63 = vld [vmem:[#allocation11 + $0xf0] sm:$0xf]  ;;  %v1214_v0 = vor.u32 %v1446_v62, %v1213_v61  ;;  %v1462_v1 = vld [vmem:[#allocation11 + $0xf4] sm:$0xf0]  ;;  %v1445_v2 = vld [vmem:[#allocation11 + $0x74] sm:$0xf] }
  0x36   :  { %v1215_v3 = vld [vmem:[#allocation11 + $0x78] sm:$0xf0]  ;;  %v1278_v4 = vor.u32 %v1462_v1, %v1277_v63  ;;  %v1461_v6 = vld [vmem:[#allocation11 + $0xf4] sm:$0xf]  ;;  %v1205_v8 = vld [vmem:[#allocation11 + $0x60] sm:$0xf] }
  0x37   :  { %v1218_v5 = vor.u32 %v1445_v2, %v1215_v3  ;;  %v1279_v7 = vld [vmem:[#allocation11 + $0xf8] sm:$0xf0]  ;;  %592 = vmatpush.bf16.msra.mxu3 %v1214_v0  ;;  %v1444_v10 = vld [vmem:[#allocation11 + $0x64] sm:$0xf0]  ;;  %v1269_v11 = vld [vmem:[#allocation11 + $0xe0] sm:$0xf] }
  0x38   :  { %347 = vmatpush.bf16.msra.mxu1 %v1126_v34  ;;  %v1282_v9 = vor.u32 %v1461_v6, %v1279_v7  ;;  %v1460_v12 = vld [vmem:[#allocation11 + $0xe4] sm:$0xf0]  ;;  %v1206_v13 = vor.u32 %v1444_v10, %v1205_v8  ;;  %v1443_v15 = vld [vmem:[#allocation11 + $0x64] sm:$0xf]  ;;  %v1207_v16 = vld [vmem:[#allocation11 + $0x68] sm:$0xf0] }
  0x39   :  { %226 = vmatpush.bf16.msra.mxu0 %v1411_v32  ;;  %360 = vmatpush.bf16.msra.mxu2 %v1130_v35  ;;  %v1270_v14 = vor.u32 %v1460_v12, %v1269_v11  ;;  %v1459_v17 = vld [vmem:[#allocation11 + $0xe4] sm:$0xf]  ;;  %v233_v18 = vld [vmem:[#allocation8] sm:$0x1]  ;;  %v1210_v19 = vor.u32 %v1443_v15, %v1207_v16  ;;  %v1271_v20 = vld [vmem:[#allocation11 + $0xe8] sm:$0xf0] }
  0x3a   :  { %v1274_v21 = vor.u32 %v1459_v17, %v1271_v20  ;;  %v235_v22 = vpack.i.b16 %v233_v18, %v233_v18  ;;  %v371_v35 = vld [vmem:[%s1912_s4] sm:$0x3]  ;;  %v1442_v37 = vld [vmem:[#allocation11 + $0x54] sm:$0xf0]  ;;  %v1261_v38 = vld [vmem:[#allocation11 + $0xd0] sm:$0xf] }
  0x3b   :  { %593 = vmatpush.bf16.msra.mxu3 %v1206_v13  ;;  %v1441_v41 = vld [vmem:[#allocation11 + $0x54] sm:$0xf]  ;;  %373 = vst [vmem:[#allocation1] ss:$9 sm:$0xff] %v371_v35  ;;  %v1440_v49 = vld [vmem:[#allocation11 + $0x44] sm:$0xf0] }
  0x3c   :  { %1090 = vmatmul.msk.bf16.vlgmr.msra.gmra.mxu0 %vm208_vm2, %v176_v36  ;;  %348 = vmatpush.bf16.msra.mxu1 %v1118_v40  ;;  %v237_v23 = vperm.slane %v235_v22, 0  ;;  %v1197_v36 = vld [vmem:[#allocation11 + $0x50] sm:$0xf]  ;;  %v1458_v40 = vld [vmem:[#allocation11 + $0xd4] sm:$0xf0]  ;;  %s1753_s7 = smov [#allocation17]  }
  0x3d   :  { %361 = vmatpush.bf16.msra.mxu2 %v1122_v42  ;;  %605 = vmatpush.bf16.msrb.mxu0 %v1278_v4  ;;  %v1198_v39 = vor.u32 %v1442_v37, %v1197_v36  ;;  %v1199_v42 = vld [vmem:[#allocation11 + $0x58] sm:$0xf0]  ;;  %v1262_v43 = vor.u32 %v1458_v40, %v1261_v38  ;;  %v1457_v45 = vld [vmem:[#allocation11 + $0xd4] sm:$0xf]  ;;  %v1253_v50 = vld [vmem:[#allocation11 + $0xc0] sm:$0xf] }
  0x3e   :  { %v239_v26 = vunpack.c.l.bf16 %v237_v23  ;;  %v1202_v44 = vor.u32 %v1441_v41, %v1199_v42  ;;  %v1439_v53 = vld [vmem:[#allocation11 + $0x44] sm:$0xf]  ;;  %v1191_v54 = vld [vmem:[#allocation11 + $0x48] sm:$0xf0]  ;;  %v1438_v61 = vld [vmem:[#allocation11 + $0x34] sm:$0xf0] }
  0x3f   :  { %594 = vmatpush.bf16.msra.mxu3 %v1198_v39  ;;  %v1455_v57 = vld [vmem:[#allocation11 + $0xc4] sm:$0xf]  ;;  %v1255_v58 = vld [vmem:[#allocation11 + $0xc8] sm:$0xf0]  ;;  %v1245_v62 = vld [vmem:[#allocation11 + $0xb0] sm:$0xf] }
  0x40   :  { %349 = vmatpush.bf16.msra.mxu1 %v1110_v46  ;;  %v1263_v46 = vld [vmem:[#allocation11 + $0xd8] sm:$0xf0]  ;;  %v1454_v0 = vld [vmem:[#allocation11 + $0xb4] sm:$0xf0]  ;;  %v1437_v2 = vld [vmem:[#allocation11 + $0x34] sm:$0xf] }
  0x41   :  { %362 = vmatpush.bf16.msra.mxu2 %v1114_v48  ;;  %606 = vmatpush.bf16.msrb.mxu0 %v1270_v14  ;;  %v1266_v47 = vor.u32 %v1457_v45, %v1263_v46  ;;  %v1189_v48 = vld [vmem:[#allocation11 + $0x40] sm:$0xf]  ;;  %v1246_v1 = vor.u32 %v1454_v0, %v1245_v62  ;;  %v1183_v3 = vld [vmem:[#allocation11 + $0x38] sm:$0xf0]  ;;  %v1453_v4 = vld [vmem:[#allocation11 + $0xb4] sm:$0xf] }
  0x42   :  { %v1190_v51 = vor.u32 %v1440_v49, %v1189_v48  ;;  %v1247_v6 = vld [vmem:[#allocation11 + $0xb8] sm:$0xf0]  ;;  %v1882_v7 = vld [vmem:[#allocation1] sm:$0xff]  ;;  %v1173_v10 = vld [vmem:[#allocation11 + $0x20] sm:$0xf]  ;;  %s1058_s30 = sshll.u32 %s1753_s7, 4  ;;  %s1059_s30 = int_to_ptr.vmem [resolvable:$true] %s1058_s30 }
  0x43   :  { %v1884_v8 = vld [vmem:[#allocation1 + $0x9] sm:$0xff]  ;;  %v1436_v11 = vld [vmem:[#allocation11 + $0x24] sm:$0xf0]  ;;  %v1237_v13 = vld [vmem:[#allocation11 + $0xa0] sm:$0xf]  ;;  %s1060_s0 = sshll.u32 %s1923_s15, 4  ;;  %s1061_s0 = int_to_ptr.hbm [resolvable:$true] %s1060_s0 }
  0x44   :  { %350 = vmatpush.bf16.msra.mxu1 %v1102_v52  ;;  %v1456_v52 = vld [vmem:[#allocation11 + $0xc4] sm:$0xf0]  ;;  %595 = vmatpush.bf16.msra.mxu3 %v1190_v51  ;;  %v1174_v12 = vor.u32 %v1436_v11, %v1173_v10  ;;  %v1435_v15 = vld [vmem:[#allocation11 + $0x24] sm:$0xf]  ;;  %v645_v16 = vld [vmem:[%s1914_s6] sm:$0x3]  ;;  %v376_v51 = vpack.i.b16 %v1882_v7, %v1882_v7 }
  0x45   :  { %363 = vmatpush.bf16.msra.mxu2 %v1106_v56  ;;  %607 = vmatpush.bf16.msrb.mxu0 %v1262_v43  ;;  %v1254_v55 = vor.u32 %v1456_v52, %v1253_v50  ;;  %v1194_v56 = vor.u32 %v1439_v53, %v1191_v54  ;;  %v1452_v14 = vld [vmem:[#allocation11 + $0xa4] sm:$0xf0]  ;;  %v1175_v18 = vld [vmem:[#allocation11 + $0x28] sm:$0xf0]  ;;  %647 = vst [vmem:[#allocation1] ss:$9 sm:$0xff] %v645_v16 }
  0x46   :  { %v1238_v17 = vor.u32 %v1452_v14, %v1237_v13  ;;  %v1178_v20 = vor.u32 %v1435_v15, %v1175_v18  ;;  %v1165_v23 = vld [vmem:[#allocation11 + $0x10] sm:$0xf]  ;;  %v1432_v36 = vld [vmem:[#allocation11 + $0x4] sm:$0xf0]  ;;  %v1221_v37 = vld [vmem:[#allocation11 + $0x80] sm:$0xf]  ;;  %v379_v52 = vpack.i.b16 %v1884_v8, %v1884_v8 }
  0x47   :  { %v1448_v38 = vld [vmem:[#allocation11 + $0x84] sm:$0xf0]  ;;  %v1431_v41 = vld [vmem:[#allocation11 + $0x4] sm:$0xf]  ;;  %v1159_v42 = vld [vmem:[#allocation11 + $0x8] sm:$0xf0] }
  0x48   :  { %351 = vmatpush.bf16.msra.mxu1 %v1094_v59  ;;  %v1258_v59 = vor.u32 %v1455_v57, %v1255_v58  ;;  %v1222_v40 = vor.u32 %v1448_v38, %v1221_v37  ;;  %v1447_v43 = vld [vmem:[#allocation11 + $0x84] sm:$0xf]  ;;  %v1223_v45 = vld [vmem:[#allocation11 + $0x88] sm:$0xf0]  ;;  %v1478_v48 = vld [vmem:[#allocation12 + $0x78] sm:$0xff]  ;;  %v378_v54 = vperm.slane %v376_v51, 0 }
  0x49   :  { %364 = vmatpush.bf16.msra.mxu2 %v1098_v60  ;;  %608 = vmatpush.bf16.msrb.mxu0 %v1254_v55  ;;  %v1181_v60 = vld [vmem:[#allocation11 + $0x30] sm:$0xf]  ;;  %v1226_v46 = vor.u32 %v1447_v43, %v1223_v45  ;;  %v381_v55 = vperm.slane %v379_v52, 0  ;;  %v1468_v11 = vld [vmem:[#allocation12 + $0x28] sm:$0xff]  ;;  %v1467_v13 = vld [vmem:[#allocation12 + $0x20] sm:$0xff]  ;;  %vm1051_vm3 = vcmask 57344  }
  0x4a   :  { %v1182_v63 = vor.u32 %v1438_v61, %v1181_v60  ;;  %v1469_v49 = vld [vmem:[#allocation12 + $0x30] sm:$0xff]  ;;  %v384_v58 = vunpack.c.l.bf16 %v378_v54  ;;  %v1475_v14 = vld [vmem:[#allocation12 + $0x60] sm:$0xff]  ;;  %v1466_v15 = vld [vmem:[#allocation12 + $0x18] sm:$0xff] }
  0x4b   :  { %v1477_v50 = vld [vmem:[#allocation12 + $0x70] sm:$0xff]  ;;  %v1474_v16 = vld [vmem:[#allocation12 + $0x58] sm:$0xff] }
  0x4c   :  { %618 = vmatpush.bf16.msrb.mxu1 %v1218_v5  ;;  %596 = vmatpush.bf16.msra.mxu3 %v1182_v63  ;;  %v1186_v5 = vor.u32 %v1437_v2, %v1183_v3  ;;  %v1473_v18 = vld [vmem:[#allocation12 + $0x50] sm:$0xff] }
  0x4d   :  { %631 = vmatpush.bf16.msrb.mxu2 %v1282_v9  ;;  %609 = vmatpush.bf16.msrb.mxu0 %v1246_v1  ;;  %v1250_v9 = vor.u32 %v1453_v4, %v1247_v6 }
  0x50   :  { %619 = vmatpush.bf16.msrb.mxu1 %v1210_v19  ;;  %v1451_v19 = vld [vmem:[#allocation11 + $0xa4] sm:$0xf]  ;;  %597 = vmatpush.bf16.msra.mxu3 %v1174_v12  ;;  %v1476_v12 = vld [vmem:[#allocation12 + $0x68] sm:$0xff] }
  0x51   :  { %632 = vmatpush.bf16.msrb.mxu2 %v1274_v21  ;;  %v1239_v21 = vld [vmem:[#allocation11 + $0xa8] sm:$0xf0]  ;;  %610 = vmatpush.bf16.msrb.mxu0 %v1238_v17  ;;  %v1465_v17 = vld [vmem:[#allocation12 + $0x10] sm:$0xff] }
  0x52   :  { %v1242_v22 = vor.u32 %v1451_v19, %v1239_v21  ;;  %v1464_v19 = vld [vmem:[#allocation12 + $0x8] sm:$0xff]  ;;  %v1463_v21 = vld [vmem:[#allocation12] sm:$0xff] }
  0x54   :  { %620 = vmatpush.bf16.msrb.mxu1 %v1202_v44  ;;  %v1162_v44 = vor.u32 %v1431_v41, %v1159_v42 }
  0x55   :  { %633 = vmatpush.bf16.msrb.mxu2 %v1266_v47  ;;  %v1470_v47 = vld [vmem:[#allocation12 + $0x38] sm:$0xff] }
  0x58   :  { %621 = vmatpush.bf16.msrb.mxu1 %v1194_v56 }
  0x59   :  { %634 = vmatpush.bf16.msrb.mxu2 %v1258_v59  ;;  %v385_v59 = vunpack.c.l.bf16 %v381_v55 }
  0x5c   :  { %622 = vmatpush.bf16.msrb.mxu1 %v1186_v5 }
  0x5d   :  { %635 = vmatpush.bf16.msrb.mxu2 %v1250_v9 }
  0x60   :  { %623 = vmatpush.bf16.msrb.mxu1 %v1178_v20  ;;  %v1472_v20 = vld [vmem:[#allocation12 + $0x48] sm:$0xff] }
  0x61   :  { %636 = vmatpush.bf16.msrb.mxu2 %v1242_v22  ;;  %v1471_v22 = vld [vmem:[#allocation12 + $0x40] sm:$0xff] }
  0xb9   :  { %v228_v24 = vpop.f32.mrf.mxu0 }
  0xba   :  { %v232_v25 = vpack.c.bf16 %v228_v24, %v228_v24  ;;  %v1434_v24 = vld [vmem:[#allocation11 + $0x14] sm:$0xf0] }
  0xbc   :  { %v238_v27 = vunpack.c.l.bf16 %v232_v25  ;;  %v1229_v25 = vld [vmem:[#allocation11 + $0x90] sm:$0xf] }
  0xbe   :  { %v240_v28 = vadd.f32 %v239_v26, %v238_v27  ;;  %v1166_v26 = vor.u32 %v1434_v24, %v1165_v23  ;;  %v1450_v27 = vld [vmem:[#allocation11 + $0x94] sm:$0xf0]  ;;  %v1485_v24 = vld [vmem:[#allocation14 + $0x30] sm:$0xff] }
  0xbf   :  { %v1486_v23 = vld [vmem:[#allocation14 + $0x38] sm:$0xff] }
  0xc0   :  { %v241_v29 = vpack.c.bf16 %v240_v28, %v240_v28  ;;  %v1433_v28 = vld [vmem:[#allocation11 + $0x14] sm:$0xf]  ;;  %598 = vmatpush.bf16.msra.mxu3 %v1166_v26 }
  0xc1   :  { %v230_v30 = vpop.f32.mrf.mxu0  ;;  %v649_v26 = vld [vmem:[#allocation1 + $0x9] sm:$0xff] }
  0xc2   :  { %v242_v31 = vunpack.c.l.bf16 %v241_v29  ;;  %v1167_v29 = vld [vmem:[#allocation11 + $0x18] sm:$0xf0]  ;;  %v1230_v30 = vor.u32 %v1450_v27, %v1229_v25  ;;  %v648_v25 = vld [vmem:[#allocation1] sm:$0xff] }
  0xc4   :  { %v243_v32 = vmul.f32 0.010009766, %v242_v31  ;;  %611 = vmatpush.bf16.msrb.mxu0 %v1230_v30  ;;  %v653_v30 = vpack.i.b16 %v649_v26, %v649_v26 }
  0xc6   :  { %v246_v33 = vmax.f32 %v242_v31, %v243_v32  ;;  %v1170_v31 = vor.u32 %v1433_v28, %v1167_v29  ;;  %v1449_v32 = vld [vmem:[#allocation11 + $0x94] sm:$0xf]  ;;  %v650_v29 = vpack.i.b16 %v648_v25, %v648_v25 }
  0xc8   :  { %v247_v34 = vpack.c.bf16 %v246_v33, %v246_v33  ;;  %v1231_v33 = vld [vmem:[#allocation11 + $0x98] sm:$0xf0]  ;;  %624 = vmatpush.bf16.msrb.mxu1 %v1170_v31  ;;  %612 = vmatpush.bf16.msrb.mxu0 %v1222_v40 }
  0xc9   :  { %v1234_v35 = vor.u32 %v1449_v32, %v1231_v33  ;;  %v652_v32 = vperm.slane %v650_v29, 0  ;;  %v655_v33 = vperm.slane %v653_v30, 0 }
  0xca   :  { %352 = vmatmul.bf16.vlgmr.msra.gmra.mxu1 %v247_v34  ;;  %365 = vmatmul.bf16.vlgmr.msra.gmra.mxu2 %v247_v34  ;;  %v1157_v34 = vld [vmem:[#allocation11] sm:$0xf] }
  0xcb   :  { %v1158_v39 = vor.u32 %v1432_v36, %v1157_v34  ;;  %637 = vmatpush.bf16.msrb.mxu2 %v1234_v35  ;;  %v658_v40 = vunpack.c.l.bf16 %v652_v32  ;;  %v659_v41 = vunpack.c.l.bf16 %v655_v33 }
  0xcc   :  { %625 = vmatpush.bf16.msrb.mxu1 %v1162_v44  ;;  %815 = vmatpush.bf16.msra.mxu0 %v1478_v48 }
  0xcd   :  { %599 = vmatpush.bf16.msra.mxu3 %v1158_v39 }
  0xcf   :  { %638 = vmatpush.bf16.msrb.mxu2 %v1226_v46 }
  0xd0   :  { %816 = vmatpush.bf16.msra.mxu0 %v1477_v50  ;;  %908 = vmatpush.bf16.msra.mxu1 %v1486_v23  ;;  %v1487_v23 = vld [vmem:[#allocation15] sm:$0xff] }
  0xd1   :  { %802 = vmatpush.bf16.msrb.mxu3 %v1470_v47 }
  0xd4   :  { %817 = vmatpush.bf16.msra.mxu0 %v1476_v12  ;;  %909 = vmatpush.bf16.msra.mxu1 %v1485_v24  ;;  %v922_v24 = vld [vmem:[%s1918_s10] sm:$0x1] }
  0xd5   :  { %803 = vmatpush.bf16.msrb.mxu3 %v1469_v49  ;;  %v924_v25 = vpack.i.b16 %v922_v24, %v922_v24 }
  0xd7   :  { %v926_v26 = vperm.slane %v924_v25, 0 }
  0xd8   :  { %818 = vmatpush.bf16.msra.mxu0 %v1475_v14 }
  0xd9   :  { %804 = vmatpush.bf16.msrb.mxu3 %v1468_v11  ;;  %v928_v29 = vunpack.c.l.bf16 %v926_v26 }
  0xdc   :  { %819 = vmatpush.bf16.msra.mxu0 %v1474_v16 }
  0xdd   :  { %805 = vmatpush.bf16.msrb.mxu3 %v1467_v13 }
  0xe0   :  { %820 = vmatpush.bf16.msra.mxu0 %v1473_v18 }
  0xe1   :  { %806 = vmatpush.bf16.msrb.mxu3 %v1466_v15 }
  0xe4   :  { %821 = vmatpush.bf16.msra.mxu0 %v1472_v20  ;;  %v1490_v20 = vld [vmem:[#allocation15 + $0x18] sm:$0xff] }
  0xe5   :  { %807 = vmatpush.bf16.msrb.mxu3 %v1465_v17 }
  0xe8   :  { %822 = vmatpush.bf16.msra.mxu0 %v1471_v22  ;;  %v1488_v22 = vld [vmem:[#allocation15 + $0x8] sm:$0xff] }
  0xe9   :  { %808 = vmatpush.bf16.msrb.mxu3 %v1464_v19 }
  0xed   :  { %809 = vmatpush.bf16.msrb.mxu3 %v1463_v21  ;;  %v1489_v21 = vld [vmem:[#allocation15 + $0x10] sm:$0xff] }
 0x147   :  { %v353_v53 = vpop.f32.mrf.mxu1 }
 0x14d   :  { %v366_v56 = vpop.f32.mrf.mxu2 }
 0x14e   :  { %v370_v57 = vpack.c.bf16 %v366_v56, %v353_v53 }
 0x14f   :  { %v355_v60 = vpop.f32.mrf.mxu1 }
 0x150   :  { %v382_v61 = vunpack.c.l.bf16 %v370_v57  ;;  %v383_v62 = vunpack.c.h.bf16 %v370_v57  ;;  %v1484_v57 = vld [vmem:[#allocation14 + $0x28] sm:$0xff]  ;;  %v1481_v60 = vld [vmem:[#allocation14 + $0x10] sm:$0xff] }
 0x151   :  { %910 = vmatpush.bf16.msra.mxu1 %v1484_v57 }
 0x152   :  { %v386_v63 = vadd.f32 %v384_v58, %v382_v61  ;;  %v387_v0 = vadd.f32 %v385_v59, %v383_v62  ;;  %v1483_v58 = vld [vmem:[#allocation14 + $0x20] sm:$0xff]  ;;  %v1482_v59 = vld [vmem:[#allocation14 + $0x18] sm:$0xff]  ;;  %v1480_v61 = vld [vmem:[#allocation14 + $0x8] sm:$0xff] }
 0x153   :  { %v1479_v62 = vld [vmem:[#allocation14] sm:$0xff] }
 0x154   :  { %v388_v1 = vpack.c.bf16 %v387_v0, %v386_v63  ;;  %v1494_v63 = vld [vmem:[#allocation15 + $0x38] sm:$0xff]  ;;  %v1493_v0 = vld [vmem:[#allocation15 + $0x30] sm:$0xff] }
 0x155   :  { %v368_v2 = vpop.f32.mrf.mxu2  ;;  %911 = vmatpush.bf16.msra.mxu1 %v1483_v58  ;;  %1001 = vmatpush.bf16.msra.mxu2 %v1494_v63 }
 0x156   :  { %v389_v3 = vunpack.c.l.bf16 %v388_v1  ;;  %v390_v4 = vunpack.c.h.bf16 %v388_v1  ;;  %v829_v1 = vld [vmem:[%s1916_s8] sm:$0x1] }
 0x157   :  { %v1492_v2 = vld [vmem:[#allocation15 + $0x28] sm:$0xff] }
 0x158   :  { %v391_v5 = vmul.f32 0.010009766, %v389_v3  ;;  %v392_v6 = vmul.f32 0.010009766, %v390_v4 }
 0x159   :  { %912 = vmatpush.bf16.msra.mxu1 %v1482_v59  ;;  %1002 = vmatpush.bf16.msra.mxu2 %v1493_v0 }
 0x15a   :  { %v396_v7 = vmax.f32 %v389_v3, %v391_v5  ;;  %v397_v8 = vmax.f32 %v390_v4, %v392_v6  ;;  %v831_v4 = vpack.i.b16 %v829_v1, %v829_v1  ;;  %v1491_v5 = vld [vmem:[#allocation15 + $0x20] sm:$0xff] }
 0x15c   :  { %v398_v9 = vpack.c.bf16 %v396_v7, %v396_v7  ;;  %v399_v10 = vpack.c.bf16 %v397_v8, %v397_v8  ;;  %v833_v6 = vperm.slane %v831_v4, 0 }
 0x15d   :  { %913 = vmatpush.bf16.msra.mxu1 %v1481_v60  ;;  %1003 = vmatpush.bf16.msra.mxu2 %v1492_v2 }
 0x15e   :  { %600 = vmatmul.bf16.vlgmr.msra.gmra.mxu3 %v398_v9  ;;  %613 = vmatmul.bf16.vlgmr.msrb.gmra.mxu0 %v399_v10  ;;  %v835_v11 = vunpack.c.l.bf16 %v833_v6 }
 0x15f   :  { %626 = vmatmul.bf16.vlgmr.msrb.gmra.mxu1 %v398_v9  ;;  %639 = vmatmul.bf16.vlgmr.msrb.gmra.mxu2 %v399_v10 }
 0x161   :  { %914 = vmatpush.bf16.msra.mxu1 %v1480_v61  ;;  %1004 = vmatpush.bf16.msra.mxu2 %v1491_v5 }
 0x165   :  { %915 = vmatpush.bf16.msra.mxu1 %v1479_v62  ;;  %1005 = vmatpush.bf16.msra.mxu2 %v1490_v20 }
 0x169   :  { %1006 = vmatpush.bf16.msra.mxu2 %v1489_v21 }
 0x16d   :  { %1007 = vmatpush.bf16.msra.mxu2 %v1488_v22 }
 0x171   :  { %1008 = vmatpush.bf16.msra.mxu2 %v1487_v23 }
 0x1db   :  { %v614_v27 = vpop.f32.mrf.mxu0 }
 0x1dc   :  { %v627_v28 = vpop.f32.mrf.mxu1 }
 0x1e1   :  { %v601_v31 = vpop.f32.mrf.mxu3 }
 0x1e2   :  { %v615_v34 = vadd.f32 %v614_v27, %v601_v31  ;;  %v640_v35 = vpop.f32.mrf.mxu2 }
 0x1e3   :  { %v641_v36 = vadd.f32 %v640_v35, %v627_v28  ;;  %v616_v37 = vpop.f32.mrf.mxu0 }
 0x1e4   :  { %v629_v38 = vpop.f32.mrf.mxu1 }
 0x1e5   :  { %v644_v39 = vpack.c.bf16 %v641_v36, %v615_v34  ;;  %v1015_v38 = vld [vmem:[%s1920_s12] sm:$0x1] }
 0x1e7   :  { %v656_v42 = vunpack.c.l.bf16 %v644_v39  ;;  %v657_v43 = vunpack.c.h.bf16 %v644_v39  ;;  %v1031_v39 = vld [vmem:[#allocation2] sm:$0x1] }
 0x1e9   :  { %v660_v44 = vadd.f32 %v658_v40, %v656_v42  ;;  %v661_v45 = vadd.f32 %v659_v41, %v657_v43  ;;  %v603_v46 = vpop.f32.mrf.mxu3  ;;  %v1017_v40 = vpack.i.b16 %v1015_v38, %v1015_v38  ;;  %v1752_v41 = vmov 0  }
 0x1ea   :  { %v642_v47 = vpop.f32.mrf.mxu2  ;;  %1510 = vset.pattern.permute.xlu0 %v1752_v41 }
 0x1eb   :  { %v662_v48 = vpack.c.bf16 %v661_v45, %v660_v44  ;;  %1034 = vperm.xlu0 %1510, %v1031_v39   ;;  %v1019_v42 = vperm.slane %v1017_v40, 0 }
 0x1ed   :  { %v663_v49 = vunpack.c.l.bf16 %v662_v48  ;;  %v664_v50 = vunpack.c.h.bf16 %v662_v48  ;;  %v1021_v45 = vunpack.c.l.bf16 %v1019_v42 }
 0x1ef   :  { %v665_v51 = vmul.f32 0.010009766, %v663_v49  ;;  %v666_v52 = vmul.f32 0.010009766, %v664_v50 }
 0x1f1   :  { %v670_v53 = vmax.f32 %v663_v49, %v665_v51  ;;  %v671_v54 = vmax.f32 %v664_v50, %v666_v52 }
 0x1f3   :  { %v672_v55 = vpack.c.bf16 %v670_v53, %v670_v53  ;;  %v673_v56 = vpack.c.bf16 %v671_v54, %v671_v54  ;;  %v1030_v54 = vld [vmem:[%s1921_s13] sm:$0x1] }
 0x1f5   :  { %810 = vmatmul.bf16.vlgmr.msrb.gmra.mxu3 %v672_v55  ;;  %823 = vmatmul.bf16.vlgmr.msra.gmra.mxu0 %v673_v56 }
 0x25d   :  { %v1035_v55 = vpop.permute.xlu0 %1034 }
 0x25e   :  { %v1037_v56 = vperm.slane %v1035_v55, 0 }
 0x272   :  { %v824_v3 = vpop.f32.mrf.mxu0 }
 0x278   :  { %v811_v7 = vpop.f32.mrf.mxu3 }
 0x279   :  { %v825_v8 = vadd.f32 %v824_v3, %v811_v7 }
 0x27a   :  { %v826_v9 = vpop.f32.mrf.mxu0 }
 0x27b   :  { %v828_v10 = vpack.c.bf16 %v825_v8, %v825_v8 }
 0x27d   :  { %v834_v12 = vunpack.c.l.bf16 %v828_v10 }
 0x27f   :  { %v836_v13 = vadd.f32 %v835_v11, %v834_v12 }
 0x280   :  { %v813_v14 = vpop.f32.mrf.mxu3 }
 0x281   :  { %v837_v15 = vpack.c.bf16 %v836_v13, %v836_v13 }
 0x283   :  { %v838_v16 = vunpack.c.l.bf16 %v837_v15 }
 0x285   :  { %v839_v17 = vmul.f32 0.010009766, %v838_v16 }
 0x287   :  { %v842_v18 = vmax.f32 %v838_v16, %v839_v17 }
 0x289   :  { %v843_v19 = vpack.c.bf16 %v842_v18, %v842_v18 }
 0x28b   :  { %916 = vmatmul.bf16.vlgmr.msra.gmra.mxu1 %v843_v19 }
 0x308   :  { %v917_v27 = vpop.f32.mrf.mxu1 }
 0x309   :  { %v921_v28 = vpack.c.bf16 %v917_v27, %v917_v27 }
 0x30b   :  { %v927_v30 = vunpack.c.l.bf16 %v921_v28 }
 0x30d   :  { %v929_v31 = vadd.f32 %v928_v29, %v927_v30 }
 0x30f   :  { %v930_v32 = vpack.c.bf16 %v929_v31, %v929_v31 }
 0x310   :  { %v919_v33 = vpop.f32.mrf.mxu1 }
 0x311   :  { %v931_v34 = vunpack.c.l.bf16 %v930_v32 }
 0x313   :  { %v932_v35 = vmul.f32 0.010009766, %v931_v34 }
 0x315   :  { %v935_v36 = vmax.f32 %v931_v34, %v932_v35 }
 0x317   :  { %v936_v37 = vpack.c.bf16 %v935_v36, %v935_v36 }
 0x319   :  { %1009 = vmatmul.bf16.vlgmr.msra.gmra.mxu2 %v936_v37 }
 0x39c   :  { %v1010_v43 = vpop.f32.mrf.mxu2 }
 0x39d   :  { %v1014_v44 = vpack.c.bf16 %v1010_v43, %v1010_v43 }
 0x39f   :  { %v1020_v46 = vunpack.c.l.bf16 %v1014_v44 }
 0x3a1   :  { %v1022_v47 = vadd.f32 %v1021_v45, %v1020_v46 }
 0x3a3   :  { %v1023_v48 = vpack.c.bf16 %v1022_v47, %v1022_v47 }
 0x3a4   :  { %v1012_v49 = vpop.f32.mrf.mxu2 }
 0x3a5   :  { %v1024_v50 = vunpack.c.l.bf16 %v1023_v48 }
 0x3a7   :  { %v1025_v51 = vmul.f32 0.010009766, %v1024_v50 }
 0x3a9   :  { %v1028_v52 = vmax.f32 %v1024_v50, %v1025_v51 }
 0x3ab   :  { %v1029_v53 = vpack.c.bf16 %v1028_v52, %v1028_v52 }
 0x3ad   :  { %1045 = vmatpush.bf16.xpose.msra.mxu3 %v1029_v53 }
 0x3b4   :  { %1046 = vmatmul.bf16.vlgmr.msra.gmra.mxu3 %v1030_v54 }
 0x437   :  { %v1047_v57 = vpop.f32.mrf.mxu3 }
 0x438   :  { %v1048_v58 = vadd.f32 %v1047_v57, %v1037_v56 }
 0x43a   :  { %1052 = vst.msk [vmem:[#allocation17] sm:$0x1] %vm1051_vm3, %v1048_v58 }
 0x43b   :  { %1063 = dma.vmem_to_hbm [thread:$0]  %s1059_s30, 16, %s1061_s0, [#allocation5]  }
 0x43f   :  { %v1049_v59 = vpop.f32.mrf.mxu3 }
 0x440   :  { %1737 = dma.done.wait [#allocation5], 16  }
 0x441   :  { %1738 = vsyncadd [#allocation5], 4294967280 }
 0x442   :  { %1068 = vsyncpa [#allocation4], 1 }
 0x443   :  { %1069 = vsyncpa [#allocation7], 1 }
 0x444   :  { %1070 = vsyncpa [#allocation10], 1 }
 0x445   :  { %1071 = vsyncpa [#allocation13], 1 }
 0x446   :  { %1072 = vsyncpa [#allocation16], 1 }
 0x447   :  { %1073 = vsyncpa [#allocation5], 1 }

</bundles_post_ra>
